<compile_context>
chip_gen: v5e
topology: v5e:2x2
jax: 0.10.0
libtpu: 0.0.40
codegen_flags: <defaults>
</compile_context>

<pallas_src>
import functools

import jax
import jax.numpy as jnp
from jax.experimental import pallas as pl
from jax.experimental.pallas import tpu as pltpu

EPS = 1e-5


def convblock_kernel(x_ref, B1_ref, b1_ref, g1_ref, be1_ref,
                     B2_ref, b2_ref, g2_ref, be2_ref, A_ref,
                     out_ref, acc_ref, z_ref, *, alpha):
    """Whole ConvBlock forward on lane-dense (N, H, W*C) tiles.

    x_ref        : (N, H, WC)      input, channels interleaved in the lane dim
    B*_ref       : (WC, 3*WC)      banded conv weights (3 vertical-tap groups)
    b*/g*/be*    : (1, WC)         conv bias / BN gamma / BN beta (tiled per w)
    A_ref        : (WC, WC)        per-channel averaging matrix (kron(1/W, I_C))
    out_ref      : (N, H, WC)
    acc_ref      : (N, H, WC) f32  conv accumulator scratch
    z_ref        : (N, H, WC) f32  ReLU activation scratch (input to conv2)
    """
    N, H, WC = x_ref.shape
    M = N * H

    def conv3x3(src_ref, B_ref, b_ref):
        # One matmul: K = WC, Nout = 3*WC (one column group per vertical tap).
        x2 = src_ref[...].reshape(M, WC)
        z3 = jnp.dot(x2, B_ref[...],
                     preferred_element_type=jnp.float32).reshape(N, H, 3 * WC)
        # center vertical tap (dy = 1)
        acc_ref[...] = z3[:, :, WC:2 * WC]
        # dy = 0: output row h uses input row h-1 (top row gets zero padding)
        acc_ref[:, 1:, :] = acc_ref[:, 1:, :] + z3[:, :H - 1, :WC]
        # dy = 2: output row h uses input row h+1 (bottom row gets zero padding)
        acc_ref[:, :H - 1, :] = acc_ref[:, :H - 1, :] + z3[:, 1:, 2 * WC:]
        return acc_ref[...].reshape(M, WC) + b_ref[...]

    def batchnorm(y2d, g_ref, be_ref):
        # Training-mode BN: biased batch stats over (N, H, W) per channel.
        # Row reduce gives per-lane stats; the A matmul averages over the W
        # groups and broadcasts the per-channel value back to every lane.
        m_b = jnp.dot(jnp.mean(y2d, axis=0, keepdims=True), A_ref[...],
                      preferred_element_type=jnp.float32)
        d = y2d - m_b
        v_b = jnp.dot(jnp.mean(d * d, axis=0, keepdims=True), A_ref[...],
                      preferred_element_type=jnp.float32)
        return d * jax.lax.rsqrt(v_b + EPS) * g_ref[...] + be_ref[...]

    # conv1 -> bn1 -> relu (kept lane-dense in VMEM scratch)
    y1 = batchnorm(conv3x3(x_ref, B1_ref, b1_ref), g1_ref, be1_ref)
    z_ref[...] = jnp.maximum(y1, 0.0).reshape(N, H, WC)

    # conv2 -> bn2 (no re-padding needed: padding is baked into the banded W)
    y2 = batchnorm(conv3x3(z_ref, B2_ref, b2_ref), g2_ref, be2_ref)

    # residual: identity + alpha * x2   (identity read only here)
    out_ref[...] = (x_ref[...].astype(jnp.float32)
                    + alpha * y2.reshape(N, H, WC)).astype(out_ref.dtype)


def conv_block(x_nchw, params, alpha=1.0):
    """Pallas ConvBlock forward. x_nchw: (N, C, H, W) like the PyTorch module."""
    w1, b1, g1, be1, w2, b2, g2, be2 = params   # w*: (ky, kx, Cin, Cout)
    N, C, H, W = x_nchw.shape
    WC = W * C

    # NCHW -> lane-dense (N, H, W*C); no zero padding written to HBM.
    x = jnp.transpose(x_nchw, (0, 2, 3, 1)).reshape(N, H, WC)

    def banded(w):
        # (3,3,C,C) -> (WC, 3*WC). Column group dy holds the banded matrix for
        # vertical tap dy; the horizontal taps (and 'SAME' zero padding) are
        # encoded by shifted eye bands, channel mixing by the kron block.
        mats = []
        for dy in range(3):
            B = jnp.zeros((WC, WC), jnp.float32)
            for dx in range(3):
                B = B + jnp.kron(jnp.eye(W, W, k=1 - dx, dtype=jnp.float32),
                                 w[dy, dx].astype(jnp.float32))
            mats.append(B)
        return jnp.concatenate(mats, axis=1)

    B1, B2 = banded(w1), banded(w2)
    # Per-channel averaging/broadcast matrix for BN stats in the (w,c) lane layout.
    A = jnp.kron(jnp.ones((W, W), jnp.float32) / W, jnp.eye(C, dtype=jnp.float32))
    tile = lambda v: jnp.tile(v.astype(jnp.float32), W).reshape(1, WC)

    kernel = functools.partial(convblock_kernel, alpha=float(alpha))
    full = lambda shape: pl.BlockSpec(shape, lambda i, _s=shape: (0,) * len(_s))

    out = pl.pallas_call(
        kernel,
        out_shape=jax.ShapeDtypeStruct((N, H, WC), x.dtype),
        grid=(1,),
        in_specs=[
            full((N, H, WC)),
            full((WC, 3 * WC)), full((1, WC)), full((1, WC)), full((1, WC)),
            full((WC, 3 * WC)), full((1, WC)), full((1, WC)), full((1, WC)),
            full((WC, WC)),
        ],
        out_specs=full((N, H, WC)),
        scratch_shapes=[pltpu.VMEM((N, H, WC), jnp.float32),   # conv accumulator
                        pltpu.VMEM((N, H, WC), jnp.float32)],  # ReLU activations
        compiler_params=pltpu.CompilerParams(
            dimension_semantics=("arbitrary",),
            vmem_limit_bytes=32 * 1024 * 1024),
    )(x, B1, tile(b1), tile(g1), tile(be1), B2, tile(b2), tile(g2), tile(be2), A)

    return jnp.transpose(out.reshape(N, H, W, C), (0, 3, 1, 2))   # -> NCHW


def ref_conv_block(x_nchw, params, alpha=1.0):
    """Pure-JAX reference with identical semantics (sanity check)."""
    w1, b1, g1, be1, w2, b2, g2, be2 = params

    def conv(x, w, b):
        w_oihw = jnp.transpose(w, (3, 2, 0, 1))          # (ky,kx,Ci,Co)->(Co,Ci,ky,kx)
        y = jax.lax.conv_general_dilated(
            x, w_oihw, window_strides=(1, 1), padding="SAME",
            dimension_numbers=("NCHW", "OIHW", "NCHW"))
        return y + b[None, :, None, None]

    def bn(y, g, be):
        mean = jnp.mean(y, axis=(0, 2, 3), keepdims=True)
        var = jnp.mean((y - mean) ** 2, axis=(0, 2, 3), keepdims=True)
        return (y - mean) * jax.lax.rsqrt(var + EPS) * g[None, :, None, None] \
            + be[None, :, None, None]

    identity = x_nchw
    x1 = bn(conv(x_nchw, w1, b1), g1, be1)
    z = jnp.maximum(x1, 0.0)
    x2 = bn(conv(z, w2, b2), g2, be2)
    return identity + alpha * x2


def make_params(key, width):
    """Deterministic synthetic parameters (shapes per ConvBlock.__init__)."""
    ks = jax.random.split(key, 8)
    bound = 1.0 / jnp.sqrt(width * 9.0)                  # ~PyTorch conv default init
    w1 = jax.random.uniform(ks[0], (3, 3, width, width), jnp.float32, -bound, bound)
    b1 = jax.random.uniform(ks[1], (width,), jnp.float32, -bound, bound)
    w2 = jax.random.uniform(ks[2], (3, 3, width, width), jnp.float32, -bound, bound)
    b2 = jax.random.uniform(ks[3], (width,), jnp.float32, -bound, bound)
    g1 = 1.0 + 0.1 * jax.random.normal(ks[4], (width,), jnp.float32)
    be1 = 0.1 * jax.random.normal(ks[5], (width,), jnp.float32)
    g2 = 1.0 + 0.1 * jax.random.normal(ks[6], (width,), jnp.float32)
    be2 = 0.1 * jax.random.normal(ks[7], (width,), jnp.float32)
    return (w1, b1, g1, be1, w2, b2, g2, be2)


if __name__ == "__main__":
    key = jax.random.PRNGKey(0)
    k_x, k_p = jax.random.split(key)

    N, C, H, W = 2, 8, 16, 16                            # width=8 -> W*C = 128 lanes
    alpha = 1.0
    x = jax.random.normal(k_x, (N, C, H, W), jnp.float32)
    params = make_params(k_p, C)

    out = jax.block_until_ready(conv_block(x, params, alpha=alpha))
    ref = jax.block_until_ready(ref_conv_block(x, params, alpha=alpha))

    assert out.shape == x.shape and out.dtype == x.dtype
    err = float(jnp.max(jnp.abs(out - ref)))
    assert err < 1e-3, f"mismatch vs pure-JAX reference: {err}"

    print("KERNEL_OK")
</pallas_src>

<mosaic_0001>
module attributes {stable_mosaic.version = 11 : i64} {
  func.func @convblock_kernel(%arg0: i32, %arg1: memref<2x16x128xf32, #tpu.memory_space<vmem>>, %arg2: memref<128x384xf32, #tpu.memory_space<vmem>>, %arg3: memref<1x128xf32, #tpu.memory_space<vmem>>, %arg4: memref<1x128xf32, #tpu.memory_space<vmem>>, %arg5: memref<1x128xf32, #tpu.memory_space<vmem>>, %arg6: memref<128x384xf32, #tpu.memory_space<vmem>>, %arg7: memref<1x128xf32, #tpu.memory_space<vmem>>, %arg8: memref<1x128xf32, #tpu.memory_space<vmem>>, %arg9: memref<1x128xf32, #tpu.memory_space<vmem>>, %arg10: memref<128x128xf32, #tpu.memory_space<vmem>>, %arg11: memref<2x16x128xf32, #tpu.memory_space<vmem>>, %arg12: memref<2x16x128xf32, #tpu.memory_space<vmem>>, %arg13: memref<2x16x128xf32, #tpu.memory_space<vmem>>) attributes {dimension_semantics = [#tpu.dimension_semantics<arbitrary>], iteration_bounds = array<i64: 1>, scalar_prefetch = 0 : i64, scratch_operands = 2 : i64, tpu.core_type = #tpu.core_type<tc>, window_params = [{pipeline_mode = #tpu.pipeline_mode<synchronous>, transform_indices = @transform_0, window_bounds = array<i64: 2, 16, 128>}, {pipeline_mode = #tpu.pipeline_mode<synchronous>, transform_indices = @transform_1, window_bounds = array<i64: 128, 384>}, {pipeline_mode = #tpu.pipeline_mode<synchronous>, transform_indices = @transform_2, window_bounds = array<i64: 1, 128>}, {pipeline_mode = #tpu.pipeline_mode<synchronous>, transform_indices = @transform_3, window_bounds = array<i64: 1, 128>}, {pipeline_mode = #tpu.pipeline_mode<synchronous>, transform_indices = @transform_4, window_bounds = array<i64: 1, 128>}, {pipeline_mode = #tpu.pipeline_mode<synchronous>, transform_indices = @transform_5, window_bounds = array<i64: 128, 384>}, {pipeline_mode = #tpu.pipeline_mode<synchronous>, transform_indices = @transform_6, window_bounds = array<i64: 1, 128>}, {pipeline_mode = #tpu.pipeline_mode<synchronous>, transform_indices = @transform_7, window_bounds = array<i64: 1, 128>}, {pipeline_mode = #tpu.pipeline_mode<synchronous>, transform_indices = @transform_8, window_bounds = array<i64: 1, 128>}, {pipeline_mode = #tpu.pipeline_mode<synchronous>, transform_indices = @transform_9, window_bounds = array<i64: 128, 128>}, {pipeline_mode = #tpu.pipeline_mode<synchronous>, transform_indices = @transform_10, window_bounds = array<i64: 2, 16, 128>}]} {
    %c0 = arith.constant 0 : index
    %c0_0 = arith.constant 0 : index
    %c0_1 = arith.constant 0 : index
    %0 = vector.load %arg1[%c0, %c0_0, %c0_1] : memref<2x16x128xf32, #tpu.memory_space<vmem>>, vector<2x16x128xf32>
    %1 = vector.shape_cast %0 : vector<2x16x128xf32> to vector<32x128xf32>
    %c0_2 = arith.constant 0 : index
    %c0_3 = arith.constant 0 : index
    %2 = vector.load %arg2[%c0_2, %c0_3] : memref<128x384xf32, #tpu.memory_space<vmem>>, vector<128x384xf32>
    %cst = arith.constant dense<0.000000e+00> : vector<32x384xf32>
    %3 = tpu.matmul %1, %2, %cst {dimension_numbers = #tpu.dot_dimension_numbers<[1], [0], [0], [1], [0, 0, 1, 1], [], []>} : vector<32x128xf32>, vector<128x384xf32>, vector<32x384xf32> -> vector<32x384xf32>
    %4 = vector.shape_cast %3 : vector<32x384xf32> to vector<2x16x384xf32>
    %5 = vector.extract_strided_slice %4 {offsets = [0, 0, 128], sizes = [2, 16, 128], strides = [1, 1, 1]} : vector<2x16x384xf32> to vector<2x16x128xf32>
    %c0_4 = arith.constant 0 : index
    %c0_5 = arith.constant 0 : index
    %c0_6 = arith.constant 0 : index
    %6 = vector.load %arg12[%c0_4, %c0_5, %c0_6] : memref<2x16x128xf32, #tpu.memory_space<vmem>>, vector<2x16x128xf32>
    tpu.vector_store %arg12[%c0_4, %c0_5, %c0_6], %5 {strides = array<i32>} : memref<2x16x128xf32, #tpu.memory_space<vmem>>, vector<2x16x128xf32>,
    %c0_7 = arith.constant 0 : index
    %c1 = arith.constant 1 : index
    %c0_8 = arith.constant 0 : index
    %7 = vector.load %arg12[%c0_7, %c1, %c0_8] : memref<2x16x128xf32, #tpu.memory_space<vmem>>, vector<2x15x128xf32>
    %8 = vector.extract_strided_slice %4 {offsets = [0, 0, 0], sizes = [2, 15, 128], strides = [1, 1, 1]} : vector<2x16x384xf32> to vector<2x15x128xf32>
    %9 = arith.addf %7, %8 : vector<2x15x128xf32>
    %c0_9 = arith.constant 0 : index
    %c1_10 = arith.constant 1 : index
    %c0_11 = arith.constant 0 : index
    %10 = vector.load %arg12[%c0_9, %c1_10, %c0_11] : memref<2x16x128xf32, #tpu.memory_space<vmem>>, vector<2x15x128xf32>
    tpu.vector_store %arg12[%c0_9, %c1_10, %c0_11], %9 {strides = array<i32>} : memref<2x16x128xf32, #tpu.memory_space<vmem>>, vector<2x15x128xf32>,
    %c0_12 = arith.constant 0 : index
    %c0_13 = arith.constant 0 : index
    %c0_14 = arith.constant 0 : index
    %11 = vector.load %arg12[%c0_12, %c0_13, %c0_14] : memref<2x16x128xf32, #tpu.memory_space<vmem>>, vector<2x15x128xf32>
    %12 = vector.extract_strided_slice %4 {offsets = [0, 1, 256], sizes = [2, 15, 128], strides = [1, 1, 1]} : vector<2x16x384xf32> to vector<2x15x128xf32>
    %13 = arith.addf %11, %12 : vector<2x15x128xf32>
    %c0_15 = arith.constant 0 : index
    %c0_16 = arith.constant 0 : index
    %c0_17 = arith.constant 0 : index
    %14 = vector.load %arg12[%c0_15, %c0_16, %c0_17] : memref<2x16x128xf32, #tpu.memory_space<vmem>>, vector<2x15x128xf32>
    tpu.vector_store %arg12[%c0_15, %c0_16, %c0_17], %13 {strides = array<i32>} : memref<2x16x128xf32, #tpu.memory_space<vmem>>, vector<2x15x128xf32>,
    %c0_18 = arith.constant 0 : index
    %c0_19 = arith.constant 0 : index
    %c0_20 = arith.constant 0 : index
    %15 = vector.load %arg12[%c0_18, %c0_19, %c0_20] : memref<2x16x128xf32, #tpu.memory_space<vmem>>, vector<2x16x128xf32>
    %16 = vector.shape_cast %15 : vector<2x16x128xf32> to vector<32x128xf32>
    %c0_21 = arith.constant 0 : index
    %c0_22 = arith.constant 0 : index
    %17 = vector.load %arg3[%c0_21, %c0_22] : memref<1x128xf32, #tpu.memory_space<vmem>>, vector<1x128xf32>
    %18 = vector.broadcast %17 : vector<1x128xf32> to vector<32x128xf32>
    %19 = arith.addf %16, %18 : vector<32x128xf32>
    %cst_23 = arith.constant dense<0.000000e+00> : vector<128xf32>
    %20 = vector.multi_reduction <add>, %19, %cst_23 [0] : vector<32x128xf32> to vector<128xf32>
    %21 = vector.shape_cast %20 : vector<128xf32> to vector<1x128xf32>
    %cst_24 = arith.constant 3.200000e+01 : f32
    %22 = vector.broadcast %cst_24 : f32 to vector<1x128xf32>
    %23 = arith.divf %21, %22 : vector<1x128xf32>
    %c0_25 = arith.constant 0 : index
    %c0_26 = arith.constant 0 : index
    %24 = vector.load %arg10[%c0_25, %c0_26] : memref<128x128xf32, #tpu.memory_space<vmem>>, vector<128x128xf32>
    %cst_27 = arith.constant dense<0.000000e+00> : vector<1x128xf32>
    %25 = tpu.matmul %23, %24, %cst_27 {dimension_numbers = #tpu.dot_dimension_numbers<[1], [0], [0], [1], [0, 0, 1, 1], [], []>} : vector<1x128xf32>, vector<128x128xf32>, vector<1x128xf32> -> vector<1x128xf32>
    %26 = vector.broadcast %25 : vector<1x128xf32> to vector<32x128xf32>
    %27 = arith.subf %19, %26 : vector<32x128xf32>
    %28 = arith.mulf %27, %27 : vector<32x128xf32>
    %cst_28 = arith.constant dense<0.000000e+00> : vector<128xf32>
    %29 = vector.multi_reduction <add>, %28, %cst_28 [0] : vector<32x128xf32> to vector<128xf32>
    %30 = vector.shape_cast %29 : vector<128xf32> to vector<1x128xf32>
    %cst_29 = arith.constant 3.200000e+01 : f32
    %31 = vector.broadcast %cst_29 : f32 to vector<1x128xf32>
    %32 = arith.divf %30, %31 : vector<1x128xf32>
    %c0_30 = arith.constant 0 : index
    %c0_31 = arith.constant 0 : index
    %33 = vector.load %arg10[%c0_30, %c0_31] : memref<128x128xf32, #tpu.memory_space<vmem>>, vector<128x128xf32>
    %cst_32 = arith.constant dense<0.000000e+00> : vector<1x128xf32>
    %34 = tpu.matmul %32, %33, %cst_32 {dimension_numbers = #tpu.dot_dimension_numbers<[1], [0], [0], [1], [0, 0, 1, 1], [], []>} : vector<1x128xf32>, vector<128x128xf32>, vector<1x128xf32> -> vector<1x128xf32>
    %cst_33 = arith.constant 9.99999974E-6 : f32
    %35 = vector.broadcast %cst_33 : f32 to vector<1x128xf32>
    %36 = arith.addf %34, %35 : vector<1x128xf32>
    %37 = math.rsqrt %36 : vector<1x128xf32>
    %38 = vector.broadcast %37 : vector<1x128xf32> to vector<32x128xf32>
    %39 = arith.mulf %27, %38 : vector<32x128xf32>
    %c0_34 = arith.constant 0 : index
    %c0_35 = arith.constant 0 : index
    %40 = vector.load %arg4[%c0_34, %c0_35] : memref<1x128xf32, #tpu.memory_space<vmem>>, vector<1x128xf32>
    %41 = vector.broadcast %40 : vector<1x128xf32> to vector<32x128xf32>
    %42 = arith.mulf %39, %41 : vector<32x128xf32>
    %c0_36 = arith.constant 0 : index
    %c0_37 = arith.constant 0 : index
    %43 = vector.load %arg5[%c0_36, %c0_37] : memref<1x128xf32, #tpu.memory_space<vmem>>, vector<1x128xf32>
    %44 = vector.broadcast %43 : vector<1x128xf32> to vector<32x128xf32>
    %45 = arith.addf %42, %44 : vector<32x128xf32>
    %cst_38 = arith.constant 0.000000e+00 : f32
    %46 = vector.broadcast %cst_38 : f32 to vector<32x128xf32>
    %47 = arith.maximumf %45, %46 : vector<32x128xf32>
    %48 = vector.shape_cast %47 : vector<32x128xf32> to vector<2x16x128xf32>
    %c0_39 = arith.constant 0 : index
    %c0_40 = arith.constant 0 : index
    %c0_41 = arith.constant 0 : index
    %49 = vector.load %arg13[%c0_39, %c0_40, %c0_41] : memref<2x16x128xf32, #tpu.memory_space<vmem>>, vector<2x16x128xf32>
    tpu.vector_store %arg13[%c0_39, %c0_40, %c0_41], %48 {strides = array<i32>} : memref<2x16x128xf32, #tpu.memory_space<vmem>>, vector<2x16x128xf32>,
    %c0_42 = arith.constant 0 : index
    %c0_43 = arith.constant 0 : index
    %c0_44 = arith.constant 0 : index
    %50 = vector.load %arg13[%c0_42, %c0_43, %c0_44] : memref<2x16x128xf32, #tpu.memory_space<vmem>>, vector<2x16x128xf32>
    %51 = vector.shape_cast %50 : vector<2x16x128xf32> to vector<32x128xf32>
    %c0_45 = arith.constant 0 : index
    %c0_46 = arith.constant 0 : index
    %52 = vector.load %arg6[%c0_45, %c0_46] : memref<128x384xf32, #tpu.memory_space<vmem>>, vector<128x384xf32>
    %cst_47 = arith.constant dense<0.000000e+00> : vector<32x384xf32>
    %53 = tpu.matmul %51, %52, %cst_47 {dimension_numbers = #tpu.dot_dimension_numbers<[1], [0], [0], [1], [0, 0, 1, 1], [], []>} : vector<32x128xf32>, vector<128x384xf32>, vector<32x384xf32> -> vector<32x384xf32>
    %54 = vector.shape_cast %53 : vector<32x384xf32> to vector<2x16x384xf32>
    %55 = vector.extract_strided_slice %54 {offsets = [0, 0, 128], sizes = [2, 16, 128], strides = [1, 1, 1]} : vector<2x16x384xf32> to vector<2x16x128xf32>
    %c0_48 = arith.constant 0 : index
    %c0_49 = arith.constant 0 : index
    %c0_50 = arith.constant 0 : index
    %56 = vector.load %arg12[%c0_48, %c0_49, %c0_50] : memref<2x16x128xf32, #tpu.memory_space<vmem>>, vector<2x16x128xf32>
    tpu.vector_store %arg12[%c0_48, %c0_49, %c0_50], %55 {strides = array<i32>} : memref<2x16x128xf32, #tpu.memory_space<vmem>>, vector<2x16x128xf32>,
    %c0_51 = arith.constant 0 : index
    %c1_52 = arith.constant 1 : index
    %c0_53 = arith.constant 0 : index
    %57 = vector.load %arg12[%c0_51, %c1_52, %c0_53] : memref<2x16x128xf32, #tpu.memory_space<vmem>>, vector<2x15x128xf32>
    %58 = vector.extract_strided_slice %54 {offsets = [0, 0, 0], sizes = [2, 15, 128], strides = [1, 1, 1]} : vector<2x16x384xf32> to vector<2x15x128xf32>
    %59 = arith.addf %57, %58 : vector<2x15x128xf32>
    %c0_54 = arith.constant 0 : index
    %c1_55 = arith.constant 1 : index
    %c0_56 = arith.constant 0 : index
    %60 = vector.load %arg12[%c0_54, %c1_55, %c0_56] : memref<2x16x128xf32, #tpu.memory_space<vmem>>, vector<2x15x128xf32>
    tpu.vector_store %arg12[%c0_54, %c1_55, %c0_56], %59 {strides = array<i32>} : memref<2x16x128xf32, #tpu.memory_space<vmem>>, vector<2x15x128xf32>,
    %c0_57 = arith.constant 0 : index
    %c0_58 = arith.constant 0 : index
    %c0_59 = arith.constant 0 : index
    %61 = vector.load %arg12[%c0_57, %c0_58, %c0_59] : memref<2x16x128xf32, #tpu.memory_space<vmem>>, vector<2x15x128xf32>
    %62 = vector.extract_strided_slice %54 {offsets = [0, 1, 256], sizes = [2, 15, 128], strides = [1, 1, 1]} : vector<2x16x384xf32> to vector<2x15x128xf32>
    %63 = arith.addf %61, %62 : vector<2x15x128xf32>
    %c0_60 = arith.constant 0 : index
    %c0_61 = arith.constant 0 : index
    %c0_62 = arith.constant 0 : index
    %64 = vector.load %arg12[%c0_60, %c0_61, %c0_62] : memref<2x16x128xf32, #tpu.memory_space<vmem>>, vector<2x15x128xf32>
    tpu.vector_store %arg12[%c0_60, %c0_61, %c0_62], %63 {strides = array<i32>} : memref<2x16x128xf32, #tpu.memory_space<vmem>>, vector<2x15x128xf32>,
    %c0_63 = arith.constant 0 : index
    %c0_64 = arith.constant 0 : index
    %c0_65 = arith.constant 0 : index
    %65 = vector.load %arg12[%c0_63, %c0_64, %c0_65] : memref<2x16x128xf32, #tpu.memory_space<vmem>>, vector<2x16x128xf32>
    %66 = vector.shape_cast %65 : vector<2x16x128xf32> to vector<32x128xf32>
    %c0_66 = arith.constant 0 : index
    %c0_67 = arith.constant 0 : index
    %67 = vector.load %arg7[%c0_66, %c0_67] : memref<1x128xf32, #tpu.memory_space<vmem>>, vector<1x128xf32>
    %68 = vector.broadcast %67 : vector<1x128xf32> to vector<32x128xf32>
    %69 = arith.addf %66, %68 : vector<32x128xf32>
    %cst_68 = arith.constant dense<0.000000e+00> : vector<128xf32>
    %70 = vector.multi_reduction <add>, %69, %cst_68 [0] : vector<32x128xf32> to vector<128xf32>
    %71 = vector.shape_cast %70 : vector<128xf32> to vector<1x128xf32>
    %cst_69 = arith.constant 3.200000e+01 : f32
    %72 = vector.broadcast %cst_69 : f32 to vector<1x128xf32>
    %73 = arith.divf %71, %72 : vector<1x128xf32>
    %c0_70 = arith.constant 0 : index
    %c0_71 = arith.constant 0 : index
    %74 = vector.load %arg10[%c0_70, %c0_71] : memref<128x128xf32, #tpu.memory_space<vmem>>, vector<128x128xf32>
    %cst_72 = arith.constant dense<0.000000e+00> : vector<1x128xf32>
    %75 = tpu.matmul %73, %74, %cst_72 {dimension_numbers = #tpu.dot_dimension_numbers<[1], [0], [0], [1], [0, 0, 1, 1], [], []>} : vector<1x128xf32>, vector<128x128xf32>, vector<1x128xf32> -> vector<1x128xf32>
    %76 = vector.broadcast %75 : vector<1x128xf32> to vector<32x128xf32>
    %77 = arith.subf %69, %76 : vector<32x128xf32>
    %78 = arith.mulf %77, %77 : vector<32x128xf32>
    %cst_73 = arith.constant dense<0.000000e+00> : vector<128xf32>
    %79 = vector.multi_reduction <add>, %78, %cst_73 [0] : vector<32x128xf32> to vector<128xf32>
    %80 = vector.shape_cast %79 : vector<128xf32> to vector<1x128xf32>
    %cst_74 = arith.constant 3.200000e+01 : f32
    %81 = vector.broadcast %cst_74 : f32 to vector<1x128xf32>
    %82 = arith.divf %80, %81 : vector<1x128xf32>
    %c0_75 = arith.constant 0 : index
    %c0_76 = arith.constant 0 : index
    %83 = vector.load %arg10[%c0_75, %c0_76] : memref<128x128xf32, #tpu.memory_space<vmem>>, vector<128x128xf32>
    %cst_77 = arith.constant dense<0.000000e+00> : vector<1x128xf32>
    %84 = tpu.matmul %82, %83, %cst_77 {dimension_numbers = #tpu.dot_dimension_numbers<[1], [0], [0], [1], [0, 0, 1, 1], [], []>} : vector<1x128xf32>, vector<128x128xf32>, vector<1x128xf32> -> vector<1x128xf32>
    %cst_78 = arith.constant 9.99999974E-6 : f32
    %85 = vector.broadcast %cst_78 : f32 to vector<1x128xf32>
    %86 = arith.addf %84, %85 : vector<1x128xf32>
    %87 = math.rsqrt %86 : vector<1x128xf32>
    %88 = vector.broadcast %87 : vector<1x128xf32> to vector<32x128xf32>
    %89 = arith.mulf %77, %88 : vector<32x128xf32>
    %c0_79 = arith.constant 0 : index
    %c0_80 = arith.constant 0 : index
    %90 = vector.load %arg8[%c0_79, %c0_80] : memref<1x128xf32, #tpu.memory_space<vmem>>, vector<1x128xf32>
    %91 = vector.broadcast %90 : vector<1x128xf32> to vector<32x128xf32>
    %92 = arith.mulf %89, %91 : vector<32x128xf32>
    %c0_81 = arith.constant 0 : index
    %c0_82 = arith.constant 0 : index
    %93 = vector.load %arg9[%c0_81, %c0_82] : memref<1x128xf32, #tpu.memory_space<vmem>>, vector<1x128xf32>
    %94 = vector.broadcast %93 : vector<1x128xf32> to vector<32x128xf32>
    %95 = arith.addf %92, %94 : vector<32x128xf32>
    %c0_83 = arith.constant 0 : index
    %c0_84 = arith.constant 0 : index
    %c0_85 = arith.constant 0 : index
    %96 = vector.load %arg1[%c0_83, %c0_84, %c0_85] : memref<2x16x128xf32, #tpu.memory_space<vmem>>, vector<2x16x128xf32>
    %97 = vector.shape_cast %95 : vector<32x128xf32> to vector<2x16x128xf32>
    %cst_86 = arith.constant 1.000000e+00 : f32
    %98 = vector.broadcast %cst_86 : f32 to vector<2x16x128xf32>
    %99 = arith.mulf %98, %97 : vector<2x16x128xf32>
    %100 = arith.addf %96, %99 : vector<2x16x128xf32>
    %c0_87 = arith.constant 0 : index
    %c0_88 = arith.constant 0 : index
    %c0_89 = arith.constant 0 : index
    %101 = vector.load %arg11[%c0_87, %c0_88, %c0_89] : memref<2x16x128xf32, #tpu.memory_space<vmem>>, vector<2x16x128xf32>
    tpu.vector_store %arg11[%c0_87, %c0_88, %c0_89], %100 {strides = array<i32>} : memref<2x16x128xf32, #tpu.memory_space<vmem>>, vector<2x16x128xf32>,
    return
  }
  func.func @transform_0(%arg0: i32) -> (i32, i32, i32) {
    %c0_i32 = arith.constant 0 : i32
    %c0_i32_0 = arith.constant 0 : i32
    %c0_i32_1 = arith.constant 0 : i32
    %c0_i32_2 = arith.constant 0 : i32
    return %c0_i32, %c0_i32_0, %c0_i32_1 : i32, i32, i32
  }
  func.func @transform_1(%arg0: i32) -> (i32, i32) {
    %c0_i32 = arith.constant 0 : i32
    %c0_i32_0 = arith.constant 0 : i32
    %c0_i32_1 = arith.constant 0 : i32
    return %c0_i32, %c0_i32_0 : i32, i32
  }
  func.func @transform_2(%arg0: i32) -> (i32, i32) {
    %c0_i32 = arith.constant 0 : i32
    %c0_i32_0 = arith.constant 0 : i32
    %c0_i32_1 = arith.constant 0 : i32
    return %c0_i32, %c0_i32_0 : i32, i32
  }
  func.func @transform_3(%arg0: i32) -> (i32, i32) {
    %c0_i32 = arith.constant 0 : i32
    %c0_i32_0 = arith.constant 0 : i32
    %c0_i32_1 = arith.constant 0 : i32
    return %c0_i32, %c0_i32_0 : i32, i32
  }
  func.func @transform_4(%arg0: i32) -> (i32, i32) {
    %c0_i32 = arith.constant 0 : i32
    %c0_i32_0 = arith.constant 0 : i32
    %c0_i32_1 = arith.constant 0 : i32
    return %c0_i32, %c0_i32_0 : i32, i32
  }
  func.func @transform_5(%arg0: i32) -> (i32, i32) {
    %c0_i32 = arith.constant 0 : i32
    %c0_i32_0 = arith.constant 0 : i32
    %c0_i32_1 = arith.constant 0 : i32
    return %c0_i32, %c0_i32_0 : i32, i32
  }
  func.func @transform_6(%arg0: i32) -> (i32, i32) {
    %c0_i32 = arith.constant 0 : i32
    %c0_i32_0 = arith.constant 0 : i32
    %c0_i32_1 = arith.constant 0 : i32
    return %c0_i32, %c0_i32_0 : i32, i32
  }
  func.func @transform_7(%arg0: i32) -> (i32, i32) {
    %c0_i32 = arith.constant 0 : i32
    %c0_i32_0 = arith.constant 0 : i32
    %c0_i32_1 = arith.constant 0 : i32
    return %c0_i32, %c0_i32_0 : i32, i32
  }
  func.func @transform_8(%arg0: i32) -> (i32, i32) {
    %c0_i32 = arith.constant 0 : i32
    %c0_i32_0 = arith.constant 0 : i32
    %c0_i32_1 = arith.constant 0 : i32
    return %c0_i32, %c0_i32_0 : i32, i32
  }
  func.func @transform_9(%arg0: i32) -> (i32, i32) {
    %c0_i32 = arith.constant 0 : i32
    %c0_i32_0 = arith.constant 0 : i32
    %c0_i32_1 = arith.constant 0 : i32
    return %c0_i32, %c0_i32_0 : i32, i32
  }
  func.func @transform_10(%arg0: i32) -> (i32, i32, i32) {
    %c0_i32 = arith.constant 0 : i32
    %c0_i32_0 = arith.constant 0 : i32
    %c0_i32_1 = arith.constant 0 : i32
    %c0_i32_2 = arith.constant 0 : i32
    return %c0_i32, %c0_i32_0, %c0_i32_1 : i32, i32, i32
  }
}

</mosaic_0001>

<bundles_post_ra>
// kernel: tpu_custom_call.1
= control target key start
LH: loop header
LB: loop body
LE: loop exit
PB: predicated region body
PF: predicated region fallthrough
CT: control target
= control target key end

     0   :  { %15 = vsyncpa [#allocation5], 0  ;;  %s1179_s0 = inlined_call_operand.hbm [shape: f32[2,16,128], index: 0, kind: input, shape index: {}]   ;;  %s1180_s1 = inlined_call_operand.hbm [shape: f32[128,384], index: 1, kind: input, shape index: {}]   ;;  %s1181_s2 = inlined_call_operand.vmem [shape: f32[1,128], index: 2, kind: input, shape index: {}]   ;;  %s1182_s3 = inlined_call_operand.vmem [shape: f32[1,128], index: 3, kind: input, shape index: {}]   ;;  %s1183_s4 = inlined_call_operand.vmem [shape: f32[1,128], index: 4, kind: input, shape index: {}]   ;;  %s1184_s5 = inlined_call_operand.hbm [shape: f32[128,384], index: 5, kind: input, shape index: {}]   ;;  %s1185_s6 = inlined_call_operand.vmem [shape: f32[1,128], index: 6, kind: input, shape index: {}]   ;;  %s1186_s7 = inlined_call_operand.vmem [shape: f32[1,128], index: 7, kind: input, shape index: {}]   ;;  %s1187_s8 = inlined_call_operand.vmem [shape: f32[1,128], index: 8, kind: input, shape index: {}]   ;;  %s1188_s9 = inlined_call_operand.hbm [shape: f32[128,128], index: 9, kind: input, shape index: {}]   ;;  %s1189_s10 = inlined_call_operand.hbm [shape: f32[2,16,128], index: 10, kind: output, shape index: {}]  }
   0x1   :  { %16 = vsyncpa [#allocation8], 0 }
   0x2   :  { %17 = vsyncpa [#allocation11], 0  ;;  %s36_s15 = sshll.u32 %s1180_s1, 4  ;;  %s37_s15 = int_to_ptr.hbm [resolvable:$true] %s36_s15 }
   0x3   :  { %18 = vsyncpa [#allocation6], 0  ;;  %s916_s16 = smov [#allocation7]   ;;  %s23_s20 = sshll.u32 %s1179_s0, 4  ;;  %s24_s20 = int_to_ptr.hbm [resolvable:$true] %s23_s20 }
   0x4   :  { %s38_s17 = sshll.u32 %s916_s16, 4  ;;  %s917_s21 = smov 384   ;;  %s39_s17 = int_to_ptr.vmem [resolvable:$true] %s38_s17 }
   0x5   :  { %s918_s22 = smov 24   ;;  %s919_s23 = smov [#allocation4]  }
   0x6   :  { %44 = dma.hbm_to_vmem [thread:$0]  %s37_s15, 6144, %s39_s17, [#allocation8], %s917_s21, %s917_s21, %s918_s22  }
   0x7   :  { %s25_s24 = sshll.u32 %s919_s23, 4  ;;  %s920_s25 = smov 128   ;;  %s26_s24 = int_to_ptr.vmem [resolvable:$true] %s25_s24 }
   0x8   :  { %s921_s26 = smov 8   ;;  %s55_s28 = sshll.u32 %s1184_s5, 4  ;;  %s56_s28 = int_to_ptr.hbm [resolvable:$true] %s55_s28 }
   0x9   :  { %31 = dma.hbm_to_vmem [thread:$0]  %s24_s20, 512, %s26_s24, [#allocation5], %s920_s25, %s920_s25, %s921_s26  }
   0xa   :  { %s922_s29 = smov [#allocation9]   ;;  %s74_s12 = sshll.u32 %s1188_s9, 4  ;;  %s75_s12 = int_to_ptr.hbm [resolvable:$true] %s74_s12 }
   0xb   :  { %s57_s0 = sshll.u32 %s922_s29, 4  ;;  %s923_s13 = smov [#allocation10]   ;;  %s58_s0 = int_to_ptr.vmem [resolvable:$true] %s57_s0 }
   0xc   :  { %63 = dma.hbm_to_vmem [thread:$0]  %s56_s28, 6144, %s58_s0, [#allocation8], %s917_s21, %s917_s21, %s918_s22  }
   0xd   :  { %s76_s14 = sshll.u32 %s923_s13, 4  ;;  %s77_s14 = int_to_ptr.vmem [resolvable:$true] %s76_s14 }
   0xe   :  { %82 = dma.hbm_to_vmem [thread:$0]  %s75_s12, 2048, %s77_s14, [#allocation11], %s920_s25, %s920_s25, %s921_s26  }
   0xf   :  { %908 = dma.done.wait [#allocation5], 512  }
  0x10   :  { %909 = vsyncadd [#allocation5], 4294966784 }
  0x11   :  { %910 = dma.done.wait [#allocation8], 12288  }
  0x12   :  { %911 = vsyncadd [#allocation8], 4294955008 }
  0x13   :  { %912 = dma.done.wait [#allocation11], 2048  }
  0x14   :  { %913 = vsyncadd [#allocation11], 4294965248  ;;  %v149_v0 = vld [vmem:[#allocation7 + $0x170] sm:$0xff]  ;;  %v150_v1 = vld [vmem:[#allocation7 + $0x178] sm:$0xff]  ;;  %vm262_vm0 = vcmask 1046528  }
  0x15   :  { %v146_v2 = vld [vmem:[#allocation7 + $0x158] sm:$0xff]  ;;  %180 = vmatpush.msra.mxu1 %v149_v0  ;;  %209 = vmatpush.msra.mxu2 %v150_v1  ;;  %v147_v3 = vld [vmem:[#allocation7 + $0x160] sm:$0xff]  ;;  %v144_v5 = vld [vmem:[#allocation7 + $0x148] sm:$0xff] }
  0x16   :  { %v143_v4 = vld [vmem:[#allocation7 + $0x140] sm:$0xff]  ;;  %v148_v6 = vld [vmem:[#allocation7 + $0x168] sm:$0xff]  ;;  %v145_v7 = vld [vmem:[#allocation7 + $0x150] sm:$0xff] }
  0x17   :  { %181 = vmatpush.msra.mxu1 %v146_v2  ;;  %210 = vmatpush.msra.mxu2 %v147_v3  ;;  %v140_v8 = vld [vmem:[#allocation7 + $0x128] sm:$0xff]  ;;  %v141_v9 = vld [vmem:[#allocation7 + $0x130] sm:$0xff]  ;;  %v142_v10 = vld [vmem:[#allocation7 + $0x138] sm:$0xff] }
  0x18   :  { %151 = vmatpush.msra.mxu0 %v148_v6  ;;  %v137_v11 = vld [vmem:[#allocation7 + $0x110] sm:$0xff]  ;;  %v138_v12 = vld [vmem:[#allocation7 + $0x118] sm:$0xff]  ;;  %v139_v13 = vld [vmem:[#allocation7 + $0x120] sm:$0xff] }
  0x19   :  { %182 = vmatpush.msra.mxu1 %v143_v4  ;;  %211 = vmatpush.msra.mxu2 %v144_v5  ;;  %v134_v14 = vld [vmem:[#allocation7 + $0xf8] sm:$0xff]  ;;  %v135_v15 = vld [vmem:[#allocation7 + $0x100] sm:$0xff]  ;;  %v136_v16 = vld [vmem:[#allocation7 + $0x108] sm:$0xff] }
  0x1a   :  { %152 = vmatpush.msra.mxu0 %v145_v7  ;;  %v131_v17 = vld [vmem:[#allocation7 + $0xe0] sm:$0xff]  ;;  %v132_v18 = vld [vmem:[#allocation7 + $0xe8] sm:$0xff]  ;;  %v133_v19 = vld [vmem:[#allocation7 + $0xf0] sm:$0xff] }
  0x1b   :  { %183 = vmatpush.msra.mxu1 %v140_v8  ;;  %212 = vmatpush.msra.mxu2 %v141_v9  ;;  %v128_v20 = vld [vmem:[#allocation7 + $0xc8] sm:$0xff]  ;;  %v129_v21 = vld [vmem:[#allocation7 + $0xd0] sm:$0xff]  ;;  %v130_v22 = vld [vmem:[#allocation7 + $0xd8] sm:$0xff] }
  0x1c   :  { %153 = vmatpush.msra.mxu0 %v142_v10  ;;  %v125_v23 = vld [vmem:[#allocation7 + $0xb0] sm:$0xff]  ;;  %v126_v24 = vld [vmem:[#allocation7 + $0xb8] sm:$0xff]  ;;  %v123_v26 = vld [vmem:[#allocation7 + $0xa0] sm:$0xff] }
  0x1d   :  { %184 = vmatpush.msra.mxu1 %v137_v11  ;;  %213 = vmatpush.msra.mxu2 %v138_v12  ;;  %v122_v25 = vld [vmem:[#allocation7 + $0x98] sm:$0xff]  ;;  %v127_v27 = vld [vmem:[#allocation7 + $0xc0] sm:$0xff]  ;;  %v120_v29 = vld [vmem:[#allocation7 + $0x88] sm:$0xff] }
  0x1e   :  { %154 = vmatpush.msra.mxu0 %v139_v13  ;;  %v119_v28 = vld [vmem:[#allocation7 + $0x80] sm:$0xff]  ;;  %v124_v30 = vld [vmem:[#allocation7 + $0xa8] sm:$0xff]  ;;  %v121_v31 = vld [vmem:[#allocation7 + $0x90] sm:$0xff] }
  0x1f   :  { %185 = vmatpush.msra.mxu1 %v134_v14  ;;  %214 = vmatpush.msra.mxu2 %v135_v15  ;;  %v116_v32 = vld [vmem:[#allocation7 + $0x68] sm:$0xff]  ;;  %v117_v33 = vld [vmem:[#allocation7 + $0x70] sm:$0xff]  ;;  %v118_v34 = vld [vmem:[#allocation7 + $0x78] sm:$0xff] }
  0x20   :  { %155 = vmatpush.msra.mxu0 %v136_v16  ;;  %v113_v35 = vld [vmem:[#allocation7 + $0x50] sm:$0xff]  ;;  %v114_v36 = vld [vmem:[#allocation7 + $0x58] sm:$0xff]  ;;  %v115_v37 = vld [vmem:[#allocation7 + $0x60] sm:$0xff] }
  0x21   :  { %186 = vmatpush.msra.mxu1 %v131_v17  ;;  %215 = vmatpush.msra.mxu2 %v132_v18  ;;  %v110_v38 = vld [vmem:[#allocation7 + $0x38] sm:$0xff]  ;;  %v111_v39 = vld [vmem:[#allocation7 + $0x40] sm:$0xff]  ;;  %v112_v40 = vld [vmem:[#allocation7 + $0x48] sm:$0xff] }
  0x22   :  { %156 = vmatpush.msra.mxu0 %v133_v19  ;;  %v107_v41 = vld [vmem:[#allocation7 + $0x20] sm:$0xff]  ;;  %v108_v42 = vld [vmem:[#allocation7 + $0x28] sm:$0xff]  ;;  %v109_v43 = vld [vmem:[#allocation7 + $0x30] sm:$0xff] }
  0x23   :  { %187 = vmatpush.msra.mxu1 %v128_v20  ;;  %216 = vmatpush.msra.mxu2 %v129_v21  ;;  %v104_v44 = vld [vmem:[#allocation7 + $0x8] sm:$0xff]  ;;  %v105_v45 = vld [vmem:[#allocation7 + $0x10] sm:$0xff]  ;;  %v999_v46 = vld [vmem:[#allocation4] sm:$0xff] }
  0x24   :  { %157 = vmatpush.msra.mxu0 %v130_v22  ;;  %v106_v47 = vld [vmem:[#allocation7 + $0x18] sm:$0xff]  ;;  %v103_v48 = vld [vmem:[#allocation7] sm:$0xff]  ;;  %v1004_v49 = vld [vmem:[#allocation4 + $0x8] sm:$0xff] }
  0x25   :  { %188 = vmatpush.msra.mxu1 %v125_v23  ;;  %217 = vmatpush.msra.mxu2 %v126_v24  ;;  %v1009_v50 = vld [vmem:[#allocation4 + $0x10] sm:$0xff]  ;;  %v1014_v51 = vld [vmem:[#allocation4 + $0x18] sm:$0xff]  ;;  %v1029_v59 = vld [vmem:[#allocation10 + $0x68] sm:$0xff] }
  0x26   :  { %158 = vmatpush.msra.mxu0 %v127_v27  ;;  %v1021_v56 = vld [vmem:[#allocation10 + $0x78] sm:$0xff]  ;;  %v1025_v57 = vld [vmem:[#allocation10 + $0x70] sm:$0xff]  ;;  %v1033_v60 = vld [vmem:[#allocation10 + $0x60] sm:$0xff] }
  0x27   :  { %189 = vmatpush.msra.mxu1 %v122_v25  ;;  %218 = vmatpush.msra.mxu2 %v123_v26  ;;  %v1035_v61 = vld [vmem:[#allocation10 + $0x58] sm:$0xff]  ;;  %v1039_v1 = vld [vmem:[#allocation10 + $0x50] sm:$0xff]  ;;  %v1045_v5 = vld [vmem:[#allocation10 + $0x48] sm:$0xff] }
  0x28   :  { %159 = vmatpush.msra.mxu0 %v124_v30  ;;  %326 = vmatpush.msra.mxu3 %v1021_v56  ;;  %v1049_v7 = vld [vmem:[#allocation10 + $0x40] sm:$0xff]  ;;  %v1053_v8 = vld [vmem:[#allocation10 + $0x38] sm:$0xff]  ;;  %v1057_v10 = vld [vmem:[#allocation10 + $0x30] sm:$0xff]  ;;  %v924_v30 = vmov 32.0  }
  0x29   :  { %190 = vmatpush.msra.mxu1 %v119_v28  ;;  %219 = vmatpush.msra.mxu2 %v120_v29  ;;  %v1062_v12 = vld [vmem:[#allocation10 + $0x28] sm:$0xff]  ;;  %v1066_v16 = vld [vmem:[#allocation10 + $0x20] sm:$0xff]  ;;  %v1070_v18 = vld [vmem:[#allocation10 + $0x18] sm:$0xff]  ;;  %782 = vrcp.f32 %v924_v30 }
  0x2a   :  { %160 = vmatpush.msra.mxu0 %v121_v31  ;;  %327 = vmatpush.msra.mxu3 %v1025_v57  ;;  %v1074_v21 = vld [vmem:[#allocation10 + $0x10] sm:$0xff]  ;;  %v1077_v24 = vld [vmem:[#allocation10 + $0x8] sm:$0xff]  ;;  %v1081_v25 = vld [vmem:[#allocation10] sm:$0xff] }
  0x2b   :  { %191 = vmatpush.msra.mxu1 %v116_v32  ;;  %220 = vmatpush.msra.mxu2 %v117_v33 }
  0x2c   :  { %161 = vmatpush.msra.mxu0 %v118_v34  ;;  %328 = vmatpush.msra.mxu3 %v1029_v59 }
  0x2d   :  { %192 = vmatpush.msra.mxu1 %v113_v35  ;;  %221 = vmatpush.msra.mxu2 %v114_v36 }
  0x2e   :  { %162 = vmatpush.msra.mxu0 %v115_v37  ;;  %329 = vmatpush.msra.mxu3 %v1033_v60 }
  0x2f   :  { %193 = vmatpush.msra.mxu1 %v110_v38  ;;  %222 = vmatpush.msra.mxu2 %v111_v39 }
  0x30   :  { %163 = vmatpush.msra.mxu0 %v112_v40  ;;  %330 = vmatpush.msra.mxu3 %v1035_v61  ;;  %v776_v40 = vld [vmem:[%s1181_s2] ss:$0 sm:$0xff] }
  0x31   :  { %194 = vmatpush.msra.mxu1 %v107_v41  ;;  %223 = vmatpush.msra.mxu2 %v108_v42  ;;  %v783_v41 = vpop.eup %782 }
  0x32   :  { %164 = vmatpush.msra.mxu0 %v109_v43  ;;  %331 = vmatpush.msra.mxu3 %v1039_v1  ;;  %vm307_vm1 = vweird.f32 %v783_v41 }
  0x33   :  { %195 = vmatpush.msra.mxu1 %v104_v44  ;;  %224 = vmatpush.msra.mxu2 %v105_v45  ;;  %v303_v45 = vmul.f32 32.0, %v783_v41 }
  0x34   :  { %196 = vmatmul.f32.vlgmr.msra.gmra.mxu1 %v999_v46  ;;  %225 = vmatmul.f32.vlgmr.msra.gmra.mxu2 %v999_v46 }
  0x35   :  { %165 = vmatpush.msra.mxu0 %v106_v47  ;;  %332 = vmatpush.msra.mxu3 %v1045_v5 }
  0x37   :  { %166 = vmatpush.msra.mxu0 %v103_v48  ;;  %333 = vmatpush.msra.mxu3 %v1049_v7 }
  0x38   :  { %167 = vmatmul.f32.vlgmr.msra.gmra.mxu0 %v999_v46 }
  0x39   :  { %365 = vmatpush.msrb.mxu0 %v1021_v56  ;;  %334 = vmatpush.msra.mxu3 %v1053_v8 }
  0x3b   :  { %366 = vmatpush.msrb.mxu0 %v1025_v57  ;;  %335 = vmatpush.msra.mxu3 %v1057_v10 }
  0x3c   :  { %199 = vmatmul.f32.gmra.mxu1 %v1004_v49  ;;  %228 = vmatmul.f32.gmra.mxu2 %v1004_v49 }
  0x3d   :  { %367 = vmatpush.msrb.mxu0 %v1029_v59  ;;  %336 = vmatpush.msra.mxu3 %v1062_v12 }
  0x3f   :  { %368 = vmatpush.msrb.mxu0 %v1033_v60  ;;  %337 = vmatpush.msra.mxu3 %v1066_v16 }
  0x40   :  { %170 = vmatmul.f32.gmra.mxu0 %v1004_v49 }
  0x41   :  { %369 = vmatpush.msrb.mxu0 %v1035_v61  ;;  %338 = vmatpush.msra.mxu3 %v1070_v18 }
  0x43   :  { %370 = vmatpush.msrb.mxu0 %v1039_v1  ;;  %339 = vmatpush.msra.mxu3 %v1074_v21 }
  0x44   :  { %202 = vmatmul.f32.gmra.mxu1 %v1009_v50  ;;  %231 = vmatmul.f32.gmra.mxu2 %v1009_v50 }
  0x45   :  { %371 = vmatpush.msrb.mxu0 %v1045_v5  ;;  %340 = vmatpush.msra.mxu3 %v1077_v24 }
  0x47   :  { %372 = vmatpush.msrb.mxu0 %v1049_v7  ;;  %341 = vmatpush.msra.mxu3 %v1081_v25 }
  0x48   :  { %173 = vmatmul.f32.gmra.mxu0 %v1009_v50 }
  0x49   :  { %373 = vmatpush.msrb.mxu0 %v1053_v8 }
  0x4b   :  { %374 = vmatpush.msrb.mxu0 %v1057_v10 }
  0x4c   :  { %205 = vmatmul.f32.gmra.mxu1 %v1014_v51  ;;  %234 = vmatmul.f32.gmra.mxu2 %v1014_v51 }
  0x4d   :  { %375 = vmatpush.msrb.mxu0 %v1062_v12 }
  0x4f   :  { %376 = vmatpush.msrb.mxu0 %v1066_v16 }
  0x50   :  { %176 = vmatmul.f32.gmra.mxu0 %v1014_v51 }
  0x51   :  { %377 = vmatpush.msrb.mxu0 %v1070_v18 }
  0x53   :  { %378 = vmatpush.msrb.mxu0 %v1074_v21 }
  0x55   :  { %379 = vmatpush.msrb.mxu0 %v1077_v24 }
  0x57   :  { %380 = vmatpush.msrb.mxu0 %v1081_v25 }
  0x59   :  { %643 = vmatpush.msra.mxu0 %v1021_v56 }
  0x5b   :  { %644 = vmatpush.msra.mxu0 %v1025_v57 }
  0x5d   :  { %645 = vmatpush.msra.mxu0 %v1029_v59 }
  0x5f   :  { %646 = vmatpush.msra.mxu0 %v1033_v60 }
  0x61   :  { %647 = vmatpush.msra.mxu0 %v1035_v61 }
  0x63   :  { %648 = vmatpush.msra.mxu0 %v1039_v1 }
  0x65   :  { %649 = vmatpush.msra.mxu0 %v1045_v5 }
  0x67   :  { %650 = vmatpush.msra.mxu0 %v1049_v7 }
  0x69   :  { %651 = vmatpush.msra.mxu0 %v1053_v8 }
  0x6b   :  { %652 = vmatpush.msra.mxu0 %v1057_v10 }
  0x6d   :  { %653 = vmatpush.msra.mxu0 %v1062_v12 }
  0x6f   :  { %654 = vmatpush.msra.mxu0 %v1066_v16 }
  0x71   :  { %655 = vmatpush.msra.mxu0 %v1070_v18 }
  0x73   :  { %656 = vmatpush.msra.mxu0 %v1074_v21 }
  0x75   :  { %657 = vmatpush.msra.mxu0 %v1077_v24 }
  0x77   :  { %658 = vmatpush.msra.mxu0 %v1081_v25 }
  0xb1   :  { %v197_v52 = vpop.f32.mrf.mxu1 }
  0xb2   :  { %238 = vst [vmem:[#allocation2] sm:$0xff] %v197_v52 }
  0xb5   :  { %v168_v53 = vpop.f32.mrf.mxu0 }
  0xb7   :  { %v1019_v54 = vpop.f32.mrf.mxu2 }
  0xb8   :  { %v263_v27 = vrot.slane %v1019_v54, 1  ;;  %v304_v54 = vsub.f32 1.0, %v303_v45  ;;  %v467_v45 = vld [vmem:[#allocation9 + $0x138] sm:$0xff] }
  0xb9   :  { %v200_v55 = vpop.f32.mrf.mxu1 }
  0xba   :  { %239 = vst [vmem:[#allocation2 + $0x8] sm:$0xff] %v200_v55 }
  0xbd   :  { %v171_v58 = vpop.f32.mrf.mxu0 }
  0xbf   :  { %v1043_v4 = vpop.f32.mrf.mxu2 }
  0xc0   :  { %v264_v11 = vrot.slane %v1043_v4, 1 }
  0xc1   :  { %v242_v62 = vld [vmem:[#allocation2 + $0x1] sm:$0xff]  ;;  %v243_v63 = vld [vmem:[#allocation2 + $0x9] sm:$0x7f]  ;;  %v203_v0 = vpop.f32.mrf.mxu1 }
  0xc2   :  { %v246_v2 = vadd.f32 %v242_v62, %v168_v53  ;;  %v247_v3 = vadd.f32 %v243_v63, %v171_v58  ;;  %240 = vst [vmem:[#allocation2 + $0x10] sm:$0xff] %v203_v0  ;;  %v265_v35 = vsel %vm262_vm0, %v263_v27, %v264_v11  ;;  %v305_v62 = vmul.f32 %v783_v41, %v304_v54  ;;  %v462_v54 = vld [vmem:[#allocation9 + $0x110] sm:$0xff] }
  0xc4   :  { %250 = vst [vmem:[#allocation2 + $0x1] sm:$0xff] %v246_v2  ;;  %v306_v2 = vadd.f32 %v783_v41, %v305_v62  ;;  %v459_v62 = vld [vmem:[#allocation9 + $0xf8] sm:$0xff] }
  0xc5   :  { %251 = vst [vmem:[#allocation2 + $0x9] sm:$0x7f] %v247_v3  ;;  %v174_v6 = vpop.f32.mrf.mxu0 }
  0xc7   :  { %v232_v15 = vpop.f32.mrf.mxu2 }
  0xc8   :  { %v266_v28 = vrot.slane %v232_v15, 1 }
  0xc9   :  { %v206_v9 = vpop.f32.mrf.mxu1 }
  0xca   :  { %241 = vst [vmem:[#allocation2 + $0x18] sm:$0xff] %v206_v9 }
  0xcb   :  { %v254_v31 = vld [vmem:[#allocation2] sm:$0xff] }
  0xcc   :  { %v255_v13 = vld [vmem:[#allocation2 + $0x8] sm:$0x7f]  ;;  %v273_v38 = vadd.f32 %v265_v35, %v254_v31 }
  0xcd   :  { %v274_v14 = vadd.f32 %v264_v11, %v255_v13  ;;  %v177_v17 = vpop.f32.mrf.mxu0  ;;  %v474_v13 = vld [vmem:[#allocation9 + $0x170] sm:$0xff] }
  0xce   :  { %v289_v43 = vadd.f32 %v776_v40, %v273_v38  ;;  %505 = vmatpush.msrb.mxu2 %v474_v13  ;;  %v454_v13 = vld [vmem:[#allocation9 + $0xd0] sm:$0xff] }
  0xcf   :  { %278 = vst [vmem:[#allocation2 + $0x8] sm:$0x7f] %v274_v14  ;;  %v235_v26 = vpop.f32.mrf.mxu2 }
  0xd0   :  { %v267_v29 = vrot.slane %v235_v26, 1 }
  0xd1   :  { %v244_v19 = vld [vmem:[#allocation2 + $0x11] sm:$0xff]  ;;  %v245_v20 = vld [vmem:[#allocation2 + $0x19] sm:$0x7f] }
  0xd2   :  { %v248_v22 = vadd.f32 %v244_v19, %v174_v6  ;;  %v249_v23 = vadd.f32 %v245_v20, %v177_v17  ;;  %v268_v36 = vsel %vm262_vm0, %v266_v28, %v267_v29  ;;  %v1107_v6 = vsel %vm307_vm1, %v783_v41, %v306_v2  ;;  %v471_v41 = vld [vmem:[#allocation9 + $0x158] sm:$0xff]  ;;  %v456_v2 = vld [vmem:[#allocation9 + $0xe0] sm:$0xff] }
  0xd3   :  { %506 = vmatpush.msrb.mxu2 %v471_v41  ;;  %v432_v41 = vld [vmem:[#allocation9 + $0x20] sm:$0xff] }
  0xd4   :  { %252 = vst [vmem:[#allocation2 + $0x11] sm:$0xff] %v248_v22 }
  0xd5   :  { %253 = vst [vmem:[#allocation2 + $0x19] sm:$0x7f] %v249_v23 }
  0xd6   :  { %v282_v37 = vld [vmem:[#allocation2 + $0x8] sm:$0xff] }
  0xd7   :  { %v290_v42 = vadd.f32 %v776_v40, %v282_v37 }
  0xd9   :  { %v293_v47 = vadd.f32 %v290_v42, %v289_v43 }
  0xdb   :  { %v256_v32 = vld [vmem:[#allocation2 + $0x10] sm:$0xff] }
  0xdc   :  { %v257_v33 = vld [vmem:[#allocation2 + $0x18] sm:$0x7f]  ;;  %v275_v39 = vadd.f32 %v268_v36, %v256_v32 }
  0xdd   :  { %v276_v34 = vadd.f32 %v267_v29, %v257_v33 }
  0xde   :  { %v291_v44 = vadd.f32 %v776_v40, %v275_v39  ;;  %v473_v39 = vld [vmem:[#allocation9 + $0x168] sm:$0xff] }
  0xdf   :  { %280 = vst [vmem:[#allocation2 + $0x18] sm:$0x7f] %v276_v34  ;;  %476 = vmatpush.msrb.mxu1 %v473_v39  ;;  %v434_v39 = vld [vmem:[#allocation9 + $0x30] sm:$0xff] }
  0xe0   :  { %v294_v53 = vadd.f32 %v293_v47, %v291_v44  ;;  %v469_v47 = vld [vmem:[#allocation9 + $0x148] sm:$0xff] }
  0xe6   :  { %v284_v48 = vld [vmem:[#allocation2 + $0x18] sm:$0xff] }
  0xe7   :  { %v292_v52 = vadd.f32 %v776_v40, %v284_v48  ;;  %v475_v40 = vld [vmem:[#allocation9 + $0x178] sm:$0xff]  ;;  %v465_v48 = vld [vmem:[#allocation9 + $0x128] sm:$0xff] }
  0xe8   :  { %534 = vmatpush.msrb.mxu3 %v475_v40  ;;  %v436_v40 = vld [vmem:[#allocation9 + $0x40] sm:$0xff] }
  0xe9   :  { %v295_v55 = vadd.f32 %v294_v53, %v292_v52  ;;  %v466_v53 = vld [vmem:[#allocation9 + $0x130] sm:$0xff] }
  0xeb   :  { %v296_v58 = vrot.slane %v295_v55, 4 }
  0xed   :  { %v297_v63 = vadd.f32 %v296_v58, %v295_v55  ;;  %v461_v55 = vld [vmem:[#allocation9 + $0x108] sm:$0xff]  ;;  %v463_v58 = vld [vmem:[#allocation9 + $0x118] sm:$0xff] }
  0xef   :  { %v298_v0 = vrot.slane %v297_v63, 2 }
  0xf1   :  { %v299_v3 = vadd.f32 %v298_v0, %v297_v63  ;;  %v458_v63 = vld [vmem:[#allocation9 + $0xf0] sm:$0xff]  ;;  %v460_v0 = vld [vmem:[#allocation9 + $0x100] sm:$0xff] }
  0xf3   :  { %v300_v4 = vrot.slane %v299_v3, 1 }
  0xf5   :  { %v301_v9 = vadd.f32 %v300_v4, %v299_v3  ;;  %v455_v3 = vld [vmem:[#allocation9 + $0xd8] sm:$0xff]  ;;  %v457_v4 = vld [vmem:[#allocation9 + $0xe8] sm:$0xff] }
  0xf7   :  { %v309_v11 = vmul.f32 %v1107_v6, %v301_v9  ;;  %v453_v9 = vld [vmem:[#allocation9 + $0xc8] sm:$0xff] }
  0xf9   :  { %342 = vmatmul.f32.vlgmr.msra.gmra.mxu3 %v309_v11  ;;  %v452_v11 = vld [vmem:[#allocation9 + $0xc0] sm:$0xff] }
 0x17c   :  { %v343_v14 = vpop.f32.mrf.mxu3 }
 0x17d   :  { %v346_v15 = vperm.slane %v343_v14, 0  ;;  %v450_v14 = vld [vmem:[#allocation9 + $0xb0] sm:$0xff] }
 0x17f   :  { %v1113_v17 = vsub.f32 %v289_v43, %v346_v15  ;;  %v1115_v19 = vsub.f32 %v290_v42, %v346_v15  ;;  %v1117_v20 = vsub.f32 %v291_v44, %v346_v15  ;;  %v1119_v22 = vsub.f32 %v292_v52, %v346_v15  ;;  %v470_v42 = vld [vmem:[#allocation9 + $0x150] sm:$0xff]  ;;  %v472_v43 = vld [vmem:[#allocation9 + $0x160] sm:$0xff]  ;;  %v449_v15 = vld [vmem:[#allocation9 + $0xa8] sm:$0xff] }
 0x180   :  { %477 = vmatpush.msrb.mxu1 %v470_v42  ;;  %535 = vmatpush.msrb.mxu3 %v472_v43  ;;  %v468_v44 = vld [vmem:[#allocation9 + $0x140] sm:$0xff]  ;;  %v431_v42 = vld [vmem:[#allocation9 + $0x18] sm:$0xff]  ;;  %v433_v43 = vld [vmem:[#allocation9 + $0x28] sm:$0xff] }
 0x181   :  { %v351_v23 = vmul.f32 %v1113_v17, %v1113_v17  ;;  %v352_v26 = vmul.f32 %v1115_v19, %v1115_v19  ;;  %v353_v27 = vmul.f32 %v1117_v20, %v1117_v20  ;;  %v354_v29 = vmul.f32 %v1119_v22, %v1119_v22  ;;  %507 = vmatpush.msrb.mxu2 %v468_v44  ;;  %v464_v52 = vld [vmem:[#allocation9 + $0x120] sm:$0xff]  ;;  %v429_v44 = vld [vmem:[#allocation9 + $0x8] sm:$0xff] }
 0x182   :  { %478 = vmatpush.msrb.mxu1 %v467_v45  ;;  %536 = vmatpush.msrb.mxu3 %v469_v47  ;;  %v428_v45 = vld [vmem:[#allocation9] sm:$0xff]  ;;  %v430_v47 = vld [vmem:[#allocation9 + $0x10] sm:$0xff] }
 0x183   :  { %v355_v28 = vadd.f32 %v352_v26, %v351_v23  ;;  %508 = vmatpush.msrb.mxu2 %v465_v48  ;;  %v451_v23 = vld [vmem:[#allocation9 + $0xb8] sm:$0xff] }
 0x184   :  { %479 = vmatpush.msrb.mxu1 %v464_v52  ;;  %537 = vmatpush.msrb.mxu3 %v466_v53  ;;  %v447_v26 = vld [vmem:[#allocation9 + $0x98] sm:$0xff] }
 0x185   :  { %v356_v30 = vadd.f32 %v355_v28, %v353_v27  ;;  %509 = vmatpush.msrb.mxu2 %v462_v54  ;;  %v446_v27 = vld [vmem:[#allocation9 + $0x90] sm:$0xff]  ;;  %v448_v28 = vld [vmem:[#allocation9 + $0xa0] sm:$0xff] }
 0x186   :  { %480 = vmatpush.msrb.mxu1 %v461_v55  ;;  %538 = vmatpush.msrb.mxu3 %v463_v58 }
 0x187   :  { %v357_v31 = vadd.f32 %v356_v30, %v354_v29  ;;  %510 = vmatpush.msrb.mxu2 %v459_v62  ;;  %v444_v29 = vld [vmem:[#allocation9 + $0x80] sm:$0xff]  ;;  %v443_v30 = vld [vmem:[#allocation9 + $0x78] sm:$0xff] }
 0x188   :  { %481 = vmatpush.msrb.mxu1 %v458_v63  ;;  %539 = vmatpush.msrb.mxu3 %v460_v0 }
 0x189   :  { %v358_v32 = vrot.slane %v357_v31, 4  ;;  %511 = vmatpush.msrb.mxu2 %v456_v2 }
 0x18a   :  { %482 = vmatpush.msrb.mxu1 %v455_v3  ;;  %540 = vmatpush.msrb.mxu3 %v457_v4 }
 0x18b   :  { %v359_v33 = vadd.f32 %v358_v32, %v357_v31  ;;  %512 = vmatpush.msrb.mxu2 %v453_v9  ;;  %v445_v31 = vld [vmem:[#allocation9 + $0x88] sm:$0xff] }
 0x18c   :  { %483 = vmatpush.msrb.mxu1 %v452_v11  ;;  %541 = vmatpush.msrb.mxu3 %v454_v13  ;;  %v441_v32 = vld [vmem:[#allocation9 + $0x68] sm:$0xff] }
 0x18d   :  { %v360_v34 = vrot.slane %v359_v33, 2  ;;  %513 = vmatpush.msrb.mxu2 %v450_v14 }
 0x18e   :  { %484 = vmatpush.msrb.mxu1 %v449_v15  ;;  %542 = vmatpush.msrb.mxu3 %v451_v23 }
 0x18f   :  { %v361_v35 = vadd.f32 %v360_v34, %v359_v33  ;;  %514 = vmatpush.msrb.mxu2 %v447_v26  ;;  %v440_v33 = vld [vmem:[#allocation9 + $0x60] sm:$0xff]  ;;  %v442_v34 = vld [vmem:[#allocation9 + $0x70] sm:$0xff] }
 0x190   :  { %485 = vmatpush.msrb.mxu1 %v446_v27  ;;  %543 = vmatpush.msrb.mxu3 %v448_v28 }
 0x191   :  { %v362_v36 = vrot.slane %v361_v35, 1  ;;  %515 = vmatpush.msrb.mxu2 %v444_v29 }
 0x192   :  { %486 = vmatpush.msrb.mxu1 %v443_v30  ;;  %544 = vmatpush.msrb.mxu3 %v445_v31 }
 0x193   :  { %v363_v37 = vadd.f32 %v362_v36, %v361_v35  ;;  %516 = vmatpush.msrb.mxu2 %v441_v32  ;;  %v438_v35 = vld [vmem:[#allocation9 + $0x50] sm:$0xff]  ;;  %v437_v36 = vld [vmem:[#allocation9 + $0x48] sm:$0xff] }
 0x194   :  { %487 = vmatpush.msrb.mxu1 %v440_v33  ;;  %545 = vmatpush.msrb.mxu3 %v442_v34 }
 0x195   :  { %v364_v38 = vmul.f32 %v363_v37, %v1107_v6  ;;  %v439_v37 = vld [vmem:[#allocation9 + $0x58] sm:$0xff]  ;;  %517 = vmatpush.msrb.mxu2 %v438_v35 }
 0x196   :  { %488 = vmatpush.msrb.mxu1 %v437_v36  ;;  %546 = vmatpush.msrb.mxu3 %v439_v37 }
 0x197   :  { %381 = vmatmul.f32.vlgmr.msrb.gmra.mxu0 %v364_v38  ;;  %v435_v38 = vld [vmem:[#allocation9 + $0x38] sm:$0xff] }
 0x198   :  { %518 = vmatpush.msrb.mxu2 %v435_v38  ;;  %489 = vmatpush.msrb.mxu1 %v434_v39 }
 0x199   :  { %547 = vmatpush.msrb.mxu3 %v436_v40 }
 0x19a   :  { %519 = vmatpush.msrb.mxu2 %v432_v41  ;;  %490 = vmatpush.msrb.mxu1 %v431_v42 }
 0x19b   :  { %548 = vmatpush.msrb.mxu3 %v433_v43 }
 0x19c   :  { %520 = vmatpush.msrb.mxu2 %v429_v44  ;;  %491 = vmatpush.msrb.mxu1 %v428_v45 }
 0x19d   :  { %549 = vmatpush.msrb.mxu3 %v430_v47 }
 0x19e   :  { %682 = vmatpush.msra.mxu1 %v1021_v56 }
 0x1a0   :  { %683 = vmatpush.msra.mxu1 %v1025_v57 }
 0x1a2   :  { %684 = vmatpush.msra.mxu1 %v1029_v59 }
 0x1a4   :  { %685 = vmatpush.msra.mxu1 %v1033_v60 }
 0x1a6   :  { %686 = vmatpush.msra.mxu1 %v1035_v61 }
 0x1a8   :  { %687 = vmatpush.msra.mxu1 %v1039_v1  ;;  %v777_v1 = vld [vmem:[%s1182_s3] ss:$0 sm:$0xff] }
 0x1aa   :  { %688 = vmatpush.msra.mxu1 %v1045_v5 }
 0x1ac   :  { %689 = vmatpush.msra.mxu1 %v1049_v7  ;;  %v778_v7 = vld [vmem:[%s1183_s4] ss:$0 sm:$0xff] }
 0x1ae   :  { %690 = vmatpush.msra.mxu1 %v1053_v8 }
 0x1b0   :  { %691 = vmatpush.msra.mxu1 %v1057_v10 }
 0x1b2   :  { %692 = vmatpush.msra.mxu1 %v1062_v12 }
 0x1b4   :  { %693 = vmatpush.msra.mxu1 %v1066_v16 }
 0x1b6   :  { %694 = vmatpush.msra.mxu1 %v1070_v18 }
 0x1b8   :  { %695 = vmatpush.msra.mxu1 %v1074_v21 }
 0x1ba   :  { %696 = vmatpush.msra.mxu1 %v1077_v24 }
 0x1bc   :  { %697 = vmatpush.msra.mxu1 %v1081_v25 }
 0x214   :  { %v382_v48 = vpop.f32.mrf.mxu0 }
 0x215   :  { %v383_v52 = vadd.f32 1e-05, %v382_v48 }
 0x217   :  { %784 = vrsqrt.f32 %v383_v52  ;;  %vm391_vm3 = vweird.f32 %v383_v52 }
 0x21d   :  { %v785_v53 = vpop.eup %784 }
 0x21e   :  { %v386_v54 = vmul.f32 %v785_v53, %v383_v52  ;;  %vm392_vm2 = vweird.f32 %v785_v53 }
 0x21f   :  { %vm393_vm4 = vmor %vm391_vm3, %vm392_vm2 }
 0x220   :  { %v387_v55 = vmul.f32 %v785_v53, %v386_v54 }
 0x222   :  { %v388_v56 = vmul.f32 0.5, %v387_v55  ;;  %v779_v55 = vld [vmem:[%s1185_s6] ss:$0 sm:$0xff] }
 0x224   :  { %v389_v57 = vsub.f32 1.5, %v388_v56 }
 0x226   :  { %v390_v59 = vmul.f32 %v785_v53, %v389_v57 }
 0x228   :  { %v394_v60 = vsel %vm393_vm4, %v785_v53, %v390_v59 }
 0x229   :  { %v395_v61 = vperm.slane %v394_v60, 0 }
 0x22b   :  { %v396_v5 = vmul.f32 %v395_v61, %v1113_v17  ;;  %v397_v10 = vmul.f32 %v395_v61, %v1115_v19  ;;  %v398_v17 = vmul.f32 %v395_v61, %v1117_v20  ;;  %v399_v21 = vmul.f32 %v395_v61, %v1119_v22 }
 0x22d   :  { %v404_v8 = vmul.f32 %v777_v1, %v396_v5  ;;  %v405_v62 = vmul.f32 %v777_v1, %v397_v10  ;;  %v406_v18 = vmul.f32 %v777_v1, %v398_v17  ;;  %v407_v24 = vmul.f32 %v777_v1, %v399_v21 }
 0x22f   :  { %v412_v12 = vadd.f32 %v778_v7, %v404_v8  ;;  %v413_v16 = vadd.f32 %v778_v7, %v405_v62  ;;  %v414_v19 = vadd.f32 %v778_v7, %v406_v18  ;;  %v415_v25 = vadd.f32 %v778_v7, %v407_v24 }
 0x231   :  { %v416_v58 = vmax.f32 %v412_v12, 0.0  ;;  %v417_v63 = vmax.f32 %v413_v16, 0.0  ;;  %v418_v0 = vmax.f32 %v414_v19, 0.0  ;;  %v419_v2 = vmax.f32 %v415_v25, 0.0 }
 0x233   :  { %492 = vmatmul.f32.vlgmr.msrb.gmra.mxu1 %v416_v58  ;;  %521 = vmatmul.f32.vlgmr.msrb.gmra.mxu2 %v416_v58 }
 0x234   :  { %550 = vmatmul.f32.vlgmr.msrb.gmra.mxu3 %v416_v58 }
 0x23b   :  { %495 = vmatmul.f32.gmra.mxu1 %v417_v63  ;;  %524 = vmatmul.f32.gmra.mxu2 %v417_v63 }
 0x23c   :  { %553 = vmatmul.f32.gmra.mxu3 %v417_v63 }
 0x243   :  { %498 = vmatmul.f32.gmra.mxu1 %v418_v0  ;;  %527 = vmatmul.f32.gmra.mxu2 %v418_v0 }
 0x244   :  { %556 = vmatmul.f32.gmra.mxu3 %v418_v0 }
 0x24b   :  { %501 = vmatmul.f32.gmra.mxu1 %v419_v2  ;;  %530 = vmatmul.f32.gmra.mxu2 %v419_v2 }
 0x24c   :  { %559 = vmatmul.f32.gmra.mxu3 %v419_v2 }
 0x2b0   :  { %v493_v20 = vpop.f32.mrf.mxu1 }
 0x2b6   :  { %v522_v3 = vpop.f32.mrf.mxu2 }
 0x2b7   :  { %563 = vst [vmem:[#allocation2] sm:$0xff] %v522_v3  ;;  %v551_v4 = vpop.f32.mrf.mxu3 }
 0x2b8   :  { %v496_v11 = vpop.f32.mrf.mxu1  ;;  %v587_v29 = vrot.slane %v551_v4, 1 }
 0x2be   :  { %v525_v9 = vpop.f32.mrf.mxu2 }
 0x2bf   :  { %564 = vst [vmem:[#allocation2 + $0x8] sm:$0xff] %v525_v9  ;;  %v554_v13 = vpop.f32.mrf.mxu3 }
 0x2c0   :  { %v588_v27 = vrot.slane %v554_v13, 1  ;;  %v499_v28 = vpop.f32.mrf.mxu1 }
 0x2c2   :  { %v589_v33 = vsel %vm262_vm0, %v587_v29, %v588_v27 }
 0x2c6   :  { %v567_v14 = vld [vmem:[#allocation2 + $0x1] sm:$0xff]  ;;  %v568_v22 = vld [vmem:[#allocation2 + $0x9] sm:$0x7f]  ;;  %v528_v15 = vpop.f32.mrf.mxu2 }
 0x2c7   :  { %v571_v23 = vadd.f32 %v567_v14, %v493_v20  ;;  %v572_v26 = vadd.f32 %v568_v22, %v496_v11  ;;  %565 = vst [vmem:[#allocation2 + $0x10] sm:$0xff] %v528_v15  ;;  %v557_v31 = vpop.f32.mrf.mxu3 }
 0x2c8   :  { %v502_v37 = vpop.f32.mrf.mxu1  ;;  %v590_v44 = vrot.slane %v557_v31, 1 }
 0x2c9   :  { %575 = vst [vmem:[#allocation2 + $0x1] sm:$0xff] %v571_v23 }
 0x2ca   :  { %576 = vst [vmem:[#allocation2 + $0x9] sm:$0x7f] %v572_v26 }
 0x2ce   :  { %v531_v30 = vpop.f32.mrf.mxu2 }
 0x2cf   :  { %566 = vst [vmem:[#allocation2 + $0x18] sm:$0xff] %v531_v30  ;;  %v560_v42 = vpop.f32.mrf.mxu3 }
 0x2d0   :  { %v579_v32 = vld [vmem:[#allocation2] sm:$0xff]  ;;  %v591_v43 = vrot.slane %v560_v42, 1 }
 0x2d1   :  { %v580_v34 = vld [vmem:[#allocation2 + $0x8] sm:$0x7f]  ;;  %v597_v35 = vadd.f32 %v589_v33, %v579_v32  ;;  %v781_v42 = vld [vmem:[%s1187_s8] ss:$0 sm:$0xff]  ;;  %s751_s8 = sshll.u32 %s1189_s10, 4  ;;  %s752_s8 = int_to_ptr.hbm [resolvable:$true] %s751_s8 }
 0x2d2   :  { %v598_v36 = vadd.f32 %v588_v27, %v580_v34  ;;  %v592_v47 = vsel %vm262_vm0, %v590_v44, %v591_v43 }
 0x2d3   :  { %601 = vst [vmem:[#allocation2] sm:$0xff] %v597_v35  ;;  %v613_v57 = vadd.f32 %v779_v55, %v597_v35 }
 0x2d4   :  { %602 = vst [vmem:[#allocation2 + $0x8] sm:$0x7f] %v598_v36 }
 0x2d6   :  { %v569_v38 = vld [vmem:[#allocation2 + $0x11] sm:$0xff]  ;;  %v570_v39 = vld [vmem:[#allocation2 + $0x19] sm:$0x7f] }
 0x2d7   :  { %v573_v40 = vadd.f32 %v569_v38, %v499_v28  ;;  %v574_v41 = vadd.f32 %v570_v39, %v502_v37  ;;  %v780_v38 = vld [vmem:[%s1186_s7] ss:$0 sm:$0xff]  ;;  %s925_s7 = smov [#allocation12]  }
 0x2d8   :  { %s749_s21 = sshll.u32 %s925_s7, 4  ;;  %s750_s21 = int_to_ptr.vmem [resolvable:$true] %s749_s21 }
 0x2d9   :  { %577 = vst [vmem:[#allocation2 + $0x11] sm:$0xff] %v573_v40 }
 0x2da   :  { %578 = vst [vmem:[#allocation2 + $0x19] sm:$0x7f] %v574_v41 }
 0x2db   :  { %v606_v54 = vld [vmem:[#allocation2 + $0x8] sm:$0xff] }
 0x2dc   :  { %v614_v56 = vadd.f32 %v779_v55, %v606_v54 }
 0x2de   :  { %v617_v60 = vadd.f32 %v614_v56, %v613_v57 }
 0x2e0   :  { %v581_v45 = vld [vmem:[#allocation2 + $0x10] sm:$0xff] }
 0x2e1   :  { %v582_v48 = vld [vmem:[#allocation2 + $0x18] sm:$0x7f]  ;;  %v599_v52 = vadd.f32 %v592_v47, %v581_v45 }
 0x2e2   :  { %v600_v53 = vadd.f32 %v591_v43, %v582_v48 }
 0x2e3   :  { %603 = vst [vmem:[#allocation2 + $0x10] sm:$0xff] %v599_v52  ;;  %v615_v59 = vadd.f32 %v779_v55, %v599_v52 }
 0x2e4   :  { %604 = vst [vmem:[#allocation2 + $0x18] sm:$0x7f] %v600_v53 }
 0x2e5   :  { %v618_v5 = vadd.f32 %v617_v60, %v615_v59 }
 0x2eb   :  { %v608_v61 = vld [vmem:[#allocation2 + $0x18] sm:$0xff] }
 0x2ec   :  { %v616_v1 = vadd.f32 %v779_v55, %v608_v61 }
 0x2ee   :  { %v619_v7 = vadd.f32 %v618_v5, %v616_v1 }
 0x2f0   :  { %v620_v8 = vrot.slane %v619_v7, 4 }
 0x2f2   :  { %v621_v10 = vadd.f32 %v620_v8, %v619_v7 }
 0x2f4   :  { %v622_v12 = vrot.slane %v621_v10, 2 }
 0x2f6   :  { %v623_v58 = vadd.f32 %v622_v12, %v621_v10 }
 0x2f8   :  { %v624_v62 = vrot.slane %v623_v58, 1 }
 0x2fa   :  { %v625_v16 = vadd.f32 %v624_v62, %v623_v58 }
 0x2fc   :  { %v626_v17 = vmul.f32 %v625_v16, %v1107_v6 }
 0x2fe   :  { %659 = vmatmul.f32.vlgmr.msra.gmra.mxu0 %v626_v17 }
 0x37b   :  { %v660_v63 = vpop.f32.mrf.mxu0 }
 0x37c   :  { %v663_v18 = vperm.slane %v660_v63, 0 }
 0x37e   :  { %v664_v19 = vsub.f32 %v613_v57, %v663_v18  ;;  %v665_v21 = vsub.f32 %v614_v56, %v663_v18  ;;  %v666_v0 = vsub.f32 %v615_v59, %v663_v18  ;;  %v667_v24 = vsub.f32 %v616_v1, %v663_v18 }
 0x380   :  { %v668_v25 = vmul.f32 %v664_v19, %v664_v19  ;;  %v669_v2 = vmul.f32 %v665_v21, %v665_v21  ;;  %v670_v3 = vmul.f32 %v666_v0, %v666_v0  ;;  %v671_v4 = vmul.f32 %v667_v24, %v667_v24 }
 0x382   :  { %v672_v20 = vadd.f32 %v669_v2, %v668_v25 }
 0x384   :  { %v673_v9 = vadd.f32 %v672_v20, %v670_v3 }
 0x386   :  { %v674_v11 = vadd.f32 %v673_v9, %v671_v4 }
 0x388   :  { %v675_v13 = vrot.slane %v674_v11, 4 }
 0x38a   :  { %v676_v14 = vadd.f32 %v675_v13, %v674_v11 }
 0x38c   :  { %v677_v22 = vrot.slane %v676_v14, 2 }
 0x38e   :  { %v678_v15 = vadd.f32 %v677_v22, %v676_v14 }
 0x390   :  { %v679_v23 = vrot.slane %v678_v15, 1 }
 0x392   :  { %v680_v26 = vadd.f32 %v679_v23, %v678_v15 }
 0x394   :  { %v681_v27 = vmul.f32 %v680_v26, %v1107_v6 }
 0x396   :  { %698 = vmatmul.f32.vlgmr.msra.gmra.mxu1 %v681_v27 }
 0x413   :  { %v699_v28 = vpop.f32.mrf.mxu1 }
 0x414   :  { %v700_v29 = vadd.f32 1e-05, %v699_v28 }
 0x416   :  { %786 = vrsqrt.f32 %v700_v29  ;;  %vm708_vm6 = vweird.f32 %v700_v29 }
 0x41c   :  { %v787_v30 = vpop.eup %786 }
 0x41d   :  { %v703_v31 = vmul.f32 %v787_v30, %v700_v29  ;;  %vm709_vm5 = vweird.f32 %v787_v30 }
 0x41e   :  { %vm710_vm7 = vmor %vm708_vm6, %vm709_vm5 }
 0x41f   :  { %v704_v32 = vmul.f32 %v787_v30, %v703_v31 }
 0x421   :  { %v705_v33 = vmul.f32 0.5, %v704_v32 }
 0x423   :  { %v706_v34 = vsub.f32 1.5, %v705_v33 }
 0x425   :  { %v707_v35 = vmul.f32 %v787_v30, %v706_v34 }
 0x427   :  { %v711_v36 = vsel %vm710_vm7, %v787_v30, %v707_v35 }
 0x428   :  { %v712_v37 = vperm.slane %v711_v36, 0 }
 0x42a   :  { %v713_v6 = vmul.f32 %v712_v37, %v664_v19  ;;  %v714_v39 = vmul.f32 %v712_v37, %v665_v21  ;;  %v715_v40 = vmul.f32 %v712_v37, %v666_v0  ;;  %v716_v41 = vmul.f32 %v712_v37, %v667_v24 }
 0x42c   :  { %v721_v43 = vmul.f32 %v780_v38, %v713_v6  ;;  %v722_v44 = vmul.f32 %v780_v38, %v714_v39  ;;  %v723_v45 = vmul.f32 %v780_v38, %v715_v40  ;;  %v724_v47 = vmul.f32 %v780_v38, %v716_v41 }
 0x42e   :  { %v729_v48 = vadd.f32 %v781_v42, %v721_v43  ;;  %v730_v52 = vadd.f32 %v781_v42, %v722_v44  ;;  %v731_v53 = vadd.f32 %v781_v42, %v723_v45  ;;  %v732_v54 = vadd.f32 %v781_v42, %v724_v47 }
 0x430   :  { %v737_v55 = vadd.f32 %v729_v48, %v999_v46  ;;  %v738_v56 = vadd.f32 %v730_v52, %v1004_v49  ;;  %v739_v57 = vadd.f32 %v731_v53, %v1009_v50  ;;  %v740_v59 = vadd.f32 %v732_v54, %v1014_v51 }
 0x432   :  { %741 = vst [vmem:[#allocation12] sm:$0xff] %v737_v55 }
 0x433   :  { %742 = vst [vmem:[#allocation12 + $0x8] sm:$0xff] %v738_v56 }
 0x434   :  { %743 = vst [vmem:[#allocation12 + $0x10] sm:$0xff] %v739_v57 }
 0x435   :  { %744 = vst [vmem:[#allocation12 + $0x18] sm:$0xff] %v740_v59 }
 0x436   :  { %757 = dma.vmem_to_hbm [thread:$0]  %s750_s21, 512, %s752_s8, [#allocation6], %s920_s25, %s920_s25, %s921_s26  }
 0x437   :  { %914 = dma.done.wait [#allocation6], 512  }
 0x438   :  { %915 = vsyncadd [#allocation6], 4294966784 }
 0x439   :  { %762 = vsyncpa [#allocation5], 1 }
 0x43a   :  { %763 = vsyncpa [#allocation8], 1 }
 0x43b   :  { %764 = vsyncpa [#allocation11], 1 }
 0x43c   :  { %765 = vsyncpa [#allocation6], 1 }

</bundles_post_ra>
